<compile_context>
chip_gen: v7x
topology: tpu7x:2x2x1
jax: 0.10.0
libtpu: 0.0.40
codegen_flags: <defaults>
</compile_context>

<pallas_src>
import math

import jax
import jax.numpy as jnp
from jax.experimental import pallas as pl
from jax.experimental.pallas import tpu as pltpu


_COMPUTE_DTYPE = jnp.bfloat16
_VMEM_LIMIT_BYTES = 32 * 1024 * 1024        # safe on v5e / v6e / v7x
_W_RESIDENT_MAX_BYTES = 4 * 1024 * 1024     # W^T resident-in-VMEM threshold


def _cdiv(a, b):
    return -(-a // b)


def _round_up(x, m):
    return _cdiv(x, m) * m


def _m_tiling(batch, tm_cap, min_blocks=1):
    """Pick (n_m, tm, Mp): tm multiple of 16 (bf16 sublane packing), tight padding."""
    tm_cap = max(16, (tm_cap // 16) * 16)
    n_m = max(1, _cdiv(batch, tm_cap))
    if n_m < min_blocks and batch > 16 * min_blocks:
        n_m = min_blocks                     # keeps both TensorCores busy on v7x
    tm = _round_up(_cdiv(batch, n_m), 16)
    return n_m, tm, n_m * tm


def _phm_dot_bias_kernel(x_ref, wt_ref, b_ref, o_ref):
    """o = x @ W^T + bias for one (M-strip, full-N) tile; W^T held resident in VMEM."""
    o_ref[...] = (
        jnp.dot(x_ref[...], wt_ref[...], preferred_element_type=jnp.float32)
        + b_ref[...]
    ).astype(o_ref.dtype)


def _phm_tiled_kernel(x_ref, wt_ref, b_ref, o_ref, acc_ref):
    """(M, N, K)-tiled matmul; K is the last ('arbitrary') reduction grid axis."""
    k = pl.program_id(2)

    @pl.when(k == 0)
    def _():
        # Fold the bias into the accumulator init (saves a final add pass).
        acc_ref[...] = jnp.broadcast_to(b_ref[...], acc_ref.shape)

    acc_ref[...] += jnp.dot(
        x_ref[...], wt_ref[...], preferred_element_type=jnp.float32
    )

    @pl.when(k == pl.num_programs(2) - 1)
    def _():
        o_ref[...] = acc_ref[...].astype(o_ref.dtype)


@jax.jit
def phm_forward(x, a, s, bias):
    """y = x @ (sum_i kron(a_i, s_i))^T + bias.

    x: (B, in_features) f32; a: (n, n, n); s: (n, out/n, in/n); bias: (out_features,)
    """
    n, out_n, in_n = s.shape
    out_features = n * out_n
    in_features = n * in_n
    B = x.shape[0]
    out_dtype = x.dtype

    # W^T built directly (no W + transpose materialization):
    #   W[p*out_n+q, r*in_n+c] = sum_i a[i,p,r]*s[i,q,c]  ->  W^T[r*in_n+c, p*out_n+q]
    def build_wt(dtype):
        return (
            jnp.einsum("ipr,iqc->rcpq", a, s)
            .astype(dtype)
            .reshape(in_features, out_features)
        )
    # TODO(synk): for very large n a fully Kronecker-factored contraction
    # (x -> (B,n,in/n) einsum s, then einsum a) would avoid materializing W^T.

    # ---------------- path 1: tiny shapes — single grid-less call, f32 -----------
    if B <= 256 and in_features <= 512 and out_features <= 512:
        Mp = _round_up(B, 8)
        Kp = _round_up(in_features, 128)
        Np = _round_up(out_features, 128)
        x_p = jnp.pad(x, ((0, Mp - B), (0, Kp - in_features)))
        wt_p = jnp.pad(build_wt(x.dtype),
                       ((0, Kp - in_features), (0, Np - out_features)))
        b_p = jnp.pad(bias, (0, Np - out_features)).reshape(1, Np).astype(jnp.float32)
        out_p = pl.pallas_call(
            _phm_dot_bias_kernel,
            out_shape=jax.ShapeDtypeStruct((Mp, Np), out_dtype),
        )(x_p, wt_p, b_p)
        return out_p[:B, :out_features]

    cdt = _COMPUTE_DTYPE
    c_size = jnp.dtype(cdt).itemsize
    o_size = jnp.dtype(out_dtype).itemsize

    Kp = _round_up(in_features, 128)
    Np = _round_up(out_features, 128)
    wt_bytes = Kp * Np * c_size

    # ---------------- path 2: W^T (+bias) resident in VMEM, grid over M only -----
    if wt_bytes <= _W_RESIDENT_MAX_BYTES:
        row_bytes = Kp * c_size + Np * o_size          # one x row + one out row
        tm_cap = min(512, (8 * 1024 * 1024) // (2 * row_bytes))
        n_m, tm, Mp = _m_tiling(B, tm_cap, min_blocks=2)

        x_p = jnp.pad(x, ((0, Mp - B), (0, Kp - in_features))).astype(cdt)
        wt_p = jnp.pad(build_wt(cdt),
                       ((0, Kp - in_features), (0, Np - out_features)))
        b_p = jnp.pad(bias, (0, Np - out_features)).reshape(1, Np).astype(jnp.float32)

        out_p = pl.pallas_call(
            _phm_dot_bias_kernel,
            out_shape=jax.ShapeDtypeStruct((Mp, Np), out_dtype),
            grid_spec=pltpu.PrefetchScalarGridSpec(
                num_scalar_prefetch=0,
                grid=(n_m,),
                in_specs=[
                    pl.BlockSpec((tm, Kp), lambda i: (i, 0)),   # x: one M strip per step
                    pl.BlockSpec((Kp, Np), lambda i: (0, 0)),   # resident W^T
                    pl.BlockSpec((1, Np), lambda i: (0, 0)),    # resident bias
                ],
                out_specs=pl.BlockSpec((tm, Np), lambda i: (i, 0)),
            ),
            compiler_params=pltpu.CompilerParams(
                dimension_semantics=("parallel",),
                vmem_limit_bytes=_VMEM_LIMIT_BYTES,
            ),
            cost_estimate=pl.CostEstimate(
                flops=2 * Mp * Kp * Np,
                transcendentals=0,
                bytes_accessed=int(Mp * Kp * c_size + Kp * Np * c_size
                                   + Np * 4 + Mp * Np * o_size),
            ),
        )(x_p, wt_p, b_p)
        return out_p[:B, :out_features]

    # ---------------- path 3: large W — (M, N, K) tiled with f32 accumulator ------
    if Np <= 1024:
        n_n, tn = 1, Np
    else:
        n_n = _cdiv(Np, 1024)
        tn = _round_up(_cdiv(Np, n_n), 256)
        Np = n_n * tn
    if Kp <= 1024:
        n_k, tk = 1, Kp
    else:
        n_k = _cdiv(Kp, 1024)
        tk = _round_up(_cdiv(Kp, n_k), 256)
        Kp = n_k * tk
    n_m, tm, Mp = _m_tiling(B, 512, min_blocks=2 if n_n == 1 else 1)

    x_p = jnp.pad(x, ((0, Mp - B), (0, Kp - in_features))).astype(cdt)
    wt_p = jnp.pad(build_wt(cdt), ((0, Kp - in_features), (0, Np - out_features)))
    b_p = jnp.pad(bias, (0, Np - out_features)).reshape(1, Np).astype(jnp.float32)

    out_p = pl.pallas_call(
        _phm_tiled_kernel,
        out_shape=jax.ShapeDtypeStruct((Mp, Np), out_dtype),
        grid_spec=pltpu.PrefetchScalarGridSpec(
            num_scalar_prefetch=0,
            grid=(n_m, n_n, n_k),
            in_specs=[
                pl.BlockSpec((tm, tk), lambda i, j, k: (i, k)),   # x tile
                pl.BlockSpec((tk, tn), lambda i, j, k: (k, j)),   # W^T tile
                pl.BlockSpec((1, tn), lambda i, j, k: (0, j)),    # bias tile
            ],
            out_specs=pl.BlockSpec((tm, tn), lambda i, j, k: (i, j)),
            scratch_shapes=[pltpu.VMEM((tm, tn), jnp.float32)],
        ),
        compiler_params=pltpu.CompilerParams(
            dimension_semantics=("parallel", "parallel", "arbitrary"),
            vmem_limit_bytes=_VMEM_LIMIT_BYTES,
        ),
        cost_estimate=pl.CostEstimate(
            flops=2 * Mp * Kp * Np,
            transcendentals=0,
            # refetch-aware: x is re-read per N tile, W^T per M tile.
            bytes_accessed=int(Mp * Kp * c_size * n_n + Kp * Np * c_size * n_m
                               + Np * 4 + Mp * Np * o_size),
        ),
    )(x_p, wt_p, b_p)
    return out_p[:B, :out_features]


if __name__ == "__main__":
    root = jax.random.PRNGKey(0)

    def make_inputs(key, batch, in_features, out_features, n):
        k_a, k_s, k_b, k_x = jax.random.split(key, 4)
        bound_a = math.sqrt(6.0 / (n * n + n * n))              # xavier_uniform on (n,n,n)
        a = jax.random.uniform(k_a, (n, n, n), jnp.float32, -bound_a, bound_a)
        out_n, in_n = out_features // n, in_features // n
        bound_s = math.sqrt(6.0 / (out_n * in_n + n * in_n))    # xavier_uniform on (n,out/n,in/n)
        s = jax.random.uniform(k_s, (n, out_n, in_n), jnp.float32, -bound_s, bound_s)
        bound_b = 1.0 / math.sqrt(in_features)
        bias = jax.random.uniform(k_b, (out_features,), jnp.float32, -bound_b, bound_b)
        x = jax.random.normal(k_x, (batch, in_features), jnp.float32)
        return x, a, s, bias

    def reference(x, a, s, bias):
        n, out_n, in_n = s.shape
        W = jnp.einsum("ipr,iqc->pqrc", a, s).reshape(n * out_n, n * in_n)
        return x @ W.T + bias

    # (batch, in_features, out_features, n, tolerance) — exercises all 3 schedules.
    cases = [
        (8, 32, 16, 2, 2e-2),          # tiny path (grid-less, f32) — the module's demo shapes
        (384, 256, 256, 2, 5e-2),      # W-resident path (bf16 operands, f32 accumulation)
        (48, 2048, 1536, 2, 5e-2),     # (M, N, K) tiled fallback
    ]
    keys = jax.random.split(root, len(cases))
    for key, (batch, fin, fout, n, tol) in zip(keys, cases):
        x, a, s, bias = make_inputs(key, batch, fin, fout, n)
        y = jax.block_until_ready(phm_forward(x, a, s, bias))
        y_ref = reference(x, a, s, bias)
        assert y.shape == y_ref.shape, (y.shape, y_ref.shape)
        max_err = float(jnp.max(jnp.abs(y - y_ref)))
        assert jnp.allclose(y, y_ref, atol=tol, rtol=tol), (
            f"mismatch at B={batch}, in={fin}, out={fout}: max abs err {max_err:.3e}")

    print("KERNEL_OK")
</pallas_src>

<mosaic_0001>
module attributes {stable_mosaic.version = 11 : i64} {
  func.func @_phm_dot_bias_kernel(%arg0: memref<8x128xf32, #tpu.memory_space<vmem>>, %arg1: memref<128x128xf32, #tpu.memory_space<vmem>>, %arg2: memref<1x128xf32, #tpu.memory_space<vmem>>, %arg3: memref<8x128xf32, #tpu.memory_space<vmem>>) attributes {dimension_semantics = [], scalar_prefetch = 0 : i64, scratch_operands = 0 : i64, tpu.core_type = #tpu.core_type<tc>} {
    %c0 = arith.constant 0 : index
    %c0_0 = arith.constant 0 : index
    %0 = vector.load %arg0[%c0, %c0_0] : memref<8x128xf32, #tpu.memory_space<vmem>>, vector<8x128xf32>
    %c0_1 = arith.constant 0 : index
    %c0_2 = arith.constant 0 : index
    %1 = vector.load %arg1[%c0_1, %c0_2] : memref<128x128xf32, #tpu.memory_space<vmem>>, vector<128x128xf32>
    %cst = arith.constant dense<0.000000e+00> : vector<8x128xf32>
    %2 = tpu.matmul %0, %1, %cst {dimension_numbers = #tpu.dot_dimension_numbers<[1], [0], [0], [1], [0, 0, 1, 1], [], []>} : vector<8x128xf32>, vector<128x128xf32>, vector<8x128xf32> -> vector<8x128xf32>
    %c0_3 = arith.constant 0 : index
    %c0_4 = arith.constant 0 : index
    %3 = vector.load %arg2[%c0_3, %c0_4] : memref<1x128xf32, #tpu.memory_space<vmem>>, vector<1x128xf32>
    %4 = vector.broadcast %3 : vector<1x128xf32> to vector<8x128xf32>
    %5 = arith.addf %2, %4 : vector<8x128xf32>
    %c0_5 = arith.constant 0 : index
    %c0_6 = arith.constant 0 : index
    %6 = vector.load %arg3[%c0_5, %c0_6] : memref<8x128xf32, #tpu.memory_space<vmem>>, vector<8x128xf32>
    tpu.vector_store %arg3[%c0_5, %c0_6], %5 {strides = array<i32>} : memref<8x128xf32, #tpu.memory_space<vmem>>, vector<8x128xf32>,
    return
  }
}

</mosaic_0001>

<bundles_post_ra>
// kernel: phm_forward.1
= control target key start
LH: loop header
LB: loop body
LE: loop exit
PB: predicated region body
PF: predicated region fallthrough
CT: control target
= control target key end

     0   :  { %v229_v3 = vmov 0.0|0.0   ;;  %vm230_vm0 = vmmov 0   ;;  %v231_v6 = vmov 0.0   ;;  %s319_s0 = inlined_call_operand.vmem [shape: f32[8,128], index: 0, kind: input, shape index: {}]   ;;  %s320_s1 = inlined_call_operand.vmem [shape: f32[128,128], index: 1, kind: input, shape index: {}]   ;;  %s321_s2 = inlined_call_operand.vmem [shape: f32[1,128], index: 2, kind: input, shape index: {}]   ;;  %s322_s3 = inlined_call_operand.hbm [shape: f32[8,128], index: 3, kind: output, shape index: {}]  }
   0x1   :  { %v16_v0 = vld [vmem:[%s320_s1] sm:$0xff]  ;;  %v17_v1 = vld [vmem:[%s320_s1 + $0x8] sm:$0xff]  ;;  %v18_v2 = vld [vmem:[%s320_s1 + $0x10] sm:$0xff]  ;;  %177 = vmatprep.subr.bf16.mxu0 %v229_v3  ;;  %174 = vmatprep.mubr.msk.f32.mxu0 %vm230_vm0, %v231_v6 }
   0x2   :  { %v178_v4 = vpack.c.bf16 %v17_v1, %v16_v0  ;;  %v19_v5 = vld [vmem:[%s320_s1 + $0x18] sm:$0xff]  ;;  %v20_v8 = vld [vmem:[%s320_s1 + $0x20] sm:$0xff]  ;;  %v21_v9 = vld [vmem:[%s320_s1 + $0x28] sm:$0xff] }
   0x3   :  { %v181_v7 = vpack.c.bf16 %v19_v5, %v18_v2 }
   0x4   :  { %179 = vmatpush3.bf16.msra.mxu0 %v178_v4 }
   0x5   :  { %180 = vmatprep.subr.bf16.mxu0 %v229_v3 }
   0x6   :  { %8 = vsyncpa [#allocation3], 0  ;;  %v184_v10 = vpack.c.bf16 %v21_v9, %v20_v8  ;;  %v22_v11 = vld [vmem:[%s320_s1 + $0x30] sm:$0xff]  ;;  %v23_v12 = vld [vmem:[%s320_s1 + $0x38] sm:$0xff]  ;;  %s232_s21 = smov [#allocation2]  }
   0x7   :  { %v187_v13 = vpack.c.bf16 %v23_v12, %v22_v11  ;;  %v24_v14 = vld [vmem:[%s320_s1 + $0x40] sm:$0xff]  ;;  %v25_v15 = vld [vmem:[%s320_s1 + $0x48] sm:$0xff]  ;;  %v26_v17 = vld [vmem:[%s320_s1 + $0x50] sm:$0xff]  ;;  %s116_s22 = sshll.u32 %s232_s21, 4  ;;  %s117_s22 = int_to_ptr.vmem [resolvable:$true] %s116_s22 }
   0x8   :  { %182 = vmatpush3.bf16.msra.mxu0 %v181_v7  ;;  %v190_v16 = vpack.c.bf16 %v25_v15, %v24_v14  ;;  %v27_v18 = vld [vmem:[%s320_s1 + $0x58] sm:$0xff]  ;;  %v28_v20 = vld [vmem:[%s320_s1 + $0x60] sm:$0xff]  ;;  %v29_v21 = vld [vmem:[%s320_s1 + $0x68] sm:$0xff]  ;;  %p210_p1 = scmp.lt.s32.totalorder %s117_s22, %s117_s22 }
   0x9   :  { %183 = vmatprep.subr.bf16.mxu0 %v229_v3  ;;  %v193_v19 = vpack.c.bf16 %v27_v18, %v26_v17  ;;  %v196_v22 = vpack.c.bf16 %v29_v21, %v28_v20  ;;  %v30_v23 = vld [vmem:[%s320_s1 + $0x70] sm:$0xff]  ;;  %v31_v24 = vld [vmem:[%s320_s1 + $0x78] sm:$0xff]  ;;  %v15_v26 = vld [vmem:[%s319_s0] sm:$0xff]  ;;  %s205_s1 = scalar_lea.vmem %s117_s22, 128 }
   0xa   :  { %v199_v25 = vpack.c.bf16 %v31_v24, %v30_v23  ;;  %v124_v27 = vld [vmem:[%s321_s2] ss:$0 sm:$0xff]  ;;  %p206_p0 = scmp.ne.s32.totalorder %s117_s22, %s205_s1  ;;  %p211_p2 = scmp.lt.s32.totalorder %s205_s1, %s205_s1 }
   0xc   :  { %185 = vmatpush3.bf16.msra.mxu0 %v184_v10  ;;  %p212_p3 = por %p211_p2, %p210_p1 }
   0xd   :  { %186 = vmatprep.subr.bf16.mxu0 %v229_v3 }
   0xe   :  { %p213_p4 = pnand %p212_p3, %p206_p0 }
  0x10   :  { %188 = vmatpush3.bf16.msra.mxu0 %v187_v13 }
  0x11   :  { %189 = vmatprep.subr.bf16.mxu0 %v229_v3 }
  0x14   :  { %191 = vmatpush3.bf16.msra.mxu0 %v190_v16 }
  0x15   :  { %192 = vmatprep.subr.bf16.mxu0 %v229_v3 }
  0x18   :  { %194 = vmatpush3.bf16.msra.mxu0 %v193_v19 }
  0x19   :  { %195 = vmatprep.subr.bf16.mxu0 %v229_v3 }
  0x1c   :  { %197 = vmatpush3.bf16.msra.mxu0 %v196_v22 }
  0x1d   :  { %198 = vmatprep.subr.bf16.mxu0 %v229_v3 }
  0x20   :  { %200 = vmatpush3.bf16.msra.mxu0 %v199_v25 }
  0x23   :  { %175 = vmatmul.mubr.f32.vlgmr.msra.gmra.mrb[0].mxu0 %v15_v26 }
  0xf6   :  { %v105_v28 = vpop.f32.mrb[0].mxu0 }
  0xf7   :  { %v106_v29 = vadd.f32 %v124_v27, %v105_v28  ;;  %v176_v30 = vpop.f32.mrb[1].mxu0 }
  0xf9   :  { %109 = vst [vmem:[#allocation2] sm:$0xff] %v106_v29 }
  0xfa   :  { %216 = shalt.err (!%p213_p4)
}
  0xfb   :  { %s217_s24 = scalar_lea.hbm %s322_s3, 128 }
  0xfc   :  { %p218_p5 = scmp.ne.s32.totalorder %s322_s3, %s217_s24  ;;  %p221_p6 = scmp.lt.u32.totalorder %s217_s24, %s322_s3 }
  0xfe   :  { %p223_p7 = pnand %p221_p6, %p218_p5 }
 0x100   :  { %226 = shalt.err (!%p223_p7)
}
 0x101   :  { %119 = dma.vmem_to_hbm [thread:$0]  %s117_s22, 128, %s322_s3, [#allocation3]  }
 0x102   :  { %227 = dma.done.wait [#allocation3], 128  }
 0x103   :  { %228 = vsyncadd [#allocation3], 4294967168 }
 0x104   :  { %123 = vsyncpa [#allocation3], 1 }

</bundles_post_ra>
